<compile_context>
chip_gen: v6e
topology: v6e:2x2x1
jax: 0.10.0
libtpu: 0.0.40
codegen_flags: <defaults>
</compile_context>

<pallas_src>
import jax
import jax.numpy as jnp
from jax.experimental import pallas as pl
from jax.experimental.pallas import tpu as pltpu


# --------------------------------------------------------------------------- #
# Kernel
# --------------------------------------------------------------------------- #
def mlp_kernel(x_ref,
               w0_ref, b0_ref,
               w1_ref, b1_ref,
               w2_ref, b2_ref,
               w3_ref, b3_ref,
               out_ref):
    """Fused 4-layer MLP tile: Linear -> (Linear+ReLU) x2 -> Linear.

    x_ref is a (TM, D0p) bf16 batch tile; weights are bf16, biases f32.
    All dots accumulate in f32 on the MXU; bias-add / ReLU are f32 VPU ops.
    """
    x = x_ref[...]                                                  # bf16

    # Layer 0: plain Linear (no activation, matching the PyTorch forward).
    h = jnp.dot(x, w0_ref[...], preferred_element_type=jnp.float32) + b0_ref[...]

    # Layer 1: Linear + ReLU.
    h = jnp.dot(h.astype(jnp.bfloat16), w1_ref[...],
                preferred_element_type=jnp.float32) + b1_ref[...]
    h = jnp.maximum(h, 0.0)

    # Layer 2: Linear + ReLU.
    h = jnp.dot(h.astype(jnp.bfloat16), w2_ref[...],
                preferred_element_type=jnp.float32) + b2_ref[...]
    h = jnp.maximum(h, 0.0)

    # Layer 3: output Linear (no activation). Output tile is lane-dense (128k).
    y = jnp.dot(h.astype(jnp.bfloat16), w3_ref[...],
                preferred_element_type=jnp.float32) + b3_ref[...]
    out_ref[...] = y.astype(out_ref.dtype)


# --------------------------------------------------------------------------- #
# Host-side helpers
# --------------------------------------------------------------------------- #
def _round_up(x, m):
    return ((x + m - 1) // m) * m


def _pad2(a, rows, cols):
    if a.shape == (rows, cols):
        return a
    return jnp.pad(a, ((0, rows - a.shape[0]), (0, cols - a.shape[1])))


def _pick_tm(n_rows, target_tm=512):
    """Largest batch tile <= target_tm, multiple of 8, with >= 2 grid steps
    when there is enough work (so v7x's two TensorCores both get a share)."""
    n8 = _round_up(max(n_rows, 1), 8)
    if n8 <= 2 * 128:
        return n8                       # too little work to bother splitting
    half = _round_up(-(-n8 // 2), 8)    # ceil(n8/2) rounded to sublane
    return min(target_tm, half)


def _vmem_limit_bytes(buffer_bytes):
    """Explicit scoped-VMEM limit: actual footprint + headroom, clamped below
    physical VMEM (64 MiB on v7x, 128 MiB on v5e/v6e)."""
    try:
        cap = pltpu.get_tpu_info().vmem_capacity_bytes
    except Exception:
        cap = 64 << 20                  # conservative (v7x per-TC)
    want = int(buffer_bytes * 1.5) + (4 << 20)
    return int(min(max(want, 32 << 20), int(cap * 0.75)))


def prepare_params(params):
    """One-time weight prep (hoisted out of the per-call path):
    pad feature dims to multiples of 128 and cast weights to bf16."""
    (w0, b0), (w1, b1), (w2, b2), (w3, b3) = params
    input_size, hidden_size = int(w0.shape[0]), int(w0.shape[1])
    output_size = int(w3.shape[1])

    d0p = _round_up(input_size, 128)
    hp = _round_up(hidden_size, 128)
    op = _round_up(output_size, 128)

    padded = (
        _pad2(w0, d0p, hp).astype(jnp.bfloat16), _pad2(b0, 1, hp).astype(jnp.float32),
        _pad2(w1, hp, hp).astype(jnp.bfloat16), _pad2(b1, 1, hp).astype(jnp.float32),
        _pad2(w2, hp, hp).astype(jnp.bfloat16), _pad2(b2, 1, hp).astype(jnp.float32),
        _pad2(w3, hp, op).astype(jnp.bfloat16), _pad2(b3, 1, op).astype(jnp.float32),
    )
    meta = (input_size, output_size, d0p, hp, op)
    return padded, meta


def simple_mlp_forward(x, prepared, *, target_tm=512, out_dtype=jnp.float32):
    """x: any shape whose trailing dims flatten to input_size (x.view(-1, D)).
    `prepared` is the output of prepare_params (padded bf16 weights, f32 bias).
    out_dtype=jnp.bfloat16 halves the output HBM stream if lower precision is
    acceptable."""
    (w0p, b0p, w1p, b1p, w2p, b2p, w3p, b3p), (input_size, output_size,
                                               d0p, hp, op) = prepared

    x2d = x.reshape(-1, input_size)                  # glue: x.view(-1, input_size)
    n = x2d.shape[0]

    tm = _pick_tm(n, target_tm)
    n_pad = _round_up(max(n, 1), tm)

    # Pad/cast the activation only when needed (zeros don't change the math;
    # padded rows are sliced away below).
    xp = x2d.astype(jnp.bfloat16)
    if xp.shape != (n_pad, d0p):
        xp = jnp.pad(xp, ((0, n_pad - n), (0, d0p - input_size)))

    grid = (n_pad // tm,)

    # Constant index_map + single buffering -> weights/biases fetched once,
    # stay VMEM-resident with no wasted second buffer.
    def resident(shape):
        return pl.BlockSpec(shape, lambda i: (0, 0),
                            pipeline_mode=pl.Buffered(1))

    out_bytes_per_el = jnp.dtype(out_dtype).itemsize
    weight_bytes = 2 * (d0p * hp + 2 * hp * hp + hp * op) + 4 * (3 * hp + op)
    act_bytes = 2 * tm * d0p * 2                     # double-buffered bf16 input tile
    out_tile_bytes = 2 * tm * op * out_bytes_per_el  # double-buffered output tile
    interm_bytes = 2 * tm * hp * 4                   # live f32 intermediates
    needed = weight_bytes + act_bytes + out_tile_bytes + interm_bytes

    flops = 2 * n_pad * (d0p * hp + hp * hp + hp * hp + hp * op)
    bytes_accessed = (xp.size * 2 + weight_bytes
                      + n_pad * op * out_bytes_per_el)

    out = pl.pallas_call(
        mlp_kernel,
        out_shape=jax.ShapeDtypeStruct((n_pad, op), out_dtype),
        grid=grid,
        in_specs=[
            pl.BlockSpec((tm, d0p), lambda i: (i, 0)),   # pipelined activation tile
            resident(w0p.shape), resident(b0p.shape),
            resident(w1p.shape), resident(b1p.shape),
            resident(w2p.shape), resident(b2p.shape),
            resident(w3p.shape), resident(b3p.shape),
        ],
        out_specs=pl.BlockSpec((tm, op), lambda i: (i, 0)),
        compiler_params=pltpu.CompilerParams(
            dimension_semantics=("parallel",),           # megacore sharding on v7x
            vmem_limit_bytes=_vmem_limit_bytes(needed)),
        cost_estimate=pl.CostEstimate(
            flops=flops, transcendentals=0, bytes_accessed=bytes_accessed),
    )(xp, w0p, b0p, w1p, b1p, w2p, b2p, w3p, b3p)

    return out[:n, :output_size]


# --------------------------------------------------------------------------- #
# Test harness
# --------------------------------------------------------------------------- #
def init_params(key, input_size, hidden_size, output_size):
    """Deterministic synthetic init. Weights stored (in, out); biases (1, out)."""
    dims = [(input_size, hidden_size),
            (hidden_size, hidden_size),
            (hidden_size, hidden_size),
            (hidden_size, output_size)]
    params = []
    for (din, dout) in dims:
        key, kw, kb = jax.random.split(key, 3)
        scale = 1.0 / jnp.sqrt(din)
        w = jax.random.uniform(kw, (din, dout), jnp.float32, -scale, scale)
        b = jax.random.uniform(kb, (1, dout), jnp.float32, -scale, scale)
        params.append((w, b))
    return params


def reference_forward(x, params):
    """Pure-JAX reference mirroring the kernel's bf16-matmul / f32-accum recipe."""
    (w0, b0), (w1, b1), (w2, b2), (w3, b3) = params
    bf = jnp.bfloat16
    dot = lambda a, w: jnp.dot(a.astype(bf), w.astype(bf),
                               preferred_element_type=jnp.float32)
    h = x.reshape(-1, w0.shape[0]).astype(jnp.float32)
    h = dot(h, w0) + b0
    h = jnp.maximum(dot(h, w1) + b1, 0.0)
    h = jnp.maximum(dot(h, w2) + b2, 0.0)
    return dot(h, w3) + b3


if __name__ == "__main__":
    # Small MNIST-like config: 8x8 single-channel "images", hidden=32, 10 classes.
    input_size, hidden_size, output_size = 64, 32, 10
    batch = 2

    key = jax.random.PRNGKey(0)
    key, kx = jax.random.split(key)
    x = jax.random.normal(kx, (batch, 1, 8, 8), jnp.float32)   # NCHW-style input

    params = init_params(key, input_size, hidden_size, output_size)
    prepared = prepare_params(params)          # padding/casting hoisted, done once

    y = simple_mlp_forward(x, prepared)
    y = jax.block_until_ready(y)

    y_ref = reference_forward(x, params)
    assert y.shape == (batch, output_size)
    assert jnp.allclose(y, y_ref, atol=2e-3, rtol=2e-3), "mismatch vs reference"

    print("KERNEL_OK")
</pallas_src>

<mosaic_0001>
module attributes {stable_mosaic.version = 11 : i64} {
  func.func @mlp_kernel(%arg0: i32, %arg1: memref<8x128xbf16, #tpu.memory_space<vmem>>, %arg2: memref<128x128xbf16, #tpu.memory_space<vmem>>, %arg3: memref<1x128xf32, #tpu.memory_space<vmem>>, %arg4: memref<128x128xbf16, #tpu.memory_space<vmem>>, %arg5: memref<1x128xf32, #tpu.memory_space<vmem>>, %arg6: memref<128x128xbf16, #tpu.memory_space<vmem>>, %arg7: memref<1x128xf32, #tpu.memory_space<vmem>>, %arg8: memref<128x128xbf16, #tpu.memory_space<vmem>>, %arg9: memref<1x128xf32, #tpu.memory_space<vmem>>, %arg10: memref<8x128xf32, #tpu.memory_space<vmem>>) attributes {dimension_semantics = [#tpu.dimension_semantics<parallel>], iteration_bounds = array<i64: 1>, scalar_prefetch = 0 : i64, scratch_operands = 0 : i64, tpu.core_type = #tpu.core_type<tc>, window_params = [{transform_indices = @transform_0, window_bounds = array<i64: 8, 128>}, {pipeline_mode = #tpu.pipeline_mode<synchronous>, transform_indices = @transform_1, window_bounds = array<i64: 128, 128>}, {pipeline_mode = #tpu.pipeline_mode<synchronous>, transform_indices = @transform_2, window_bounds = array<i64: 1, 128>}, {pipeline_mode = #tpu.pipeline_mode<synchronous>, transform_indices = @transform_3, window_bounds = array<i64: 128, 128>}, {pipeline_mode = #tpu.pipeline_mode<synchronous>, transform_indices = @transform_4, window_bounds = array<i64: 1, 128>}, {pipeline_mode = #tpu.pipeline_mode<synchronous>, transform_indices = @transform_5, window_bounds = array<i64: 128, 128>}, {pipeline_mode = #tpu.pipeline_mode<synchronous>, transform_indices = @transform_6, window_bounds = array<i64: 1, 128>}, {pipeline_mode = #tpu.pipeline_mode<synchronous>, transform_indices = @transform_7, window_bounds = array<i64: 128, 128>}, {pipeline_mode = #tpu.pipeline_mode<synchronous>, transform_indices = @transform_8, window_bounds = array<i64: 1, 128>}, {transform_indices = @transform_9, window_bounds = array<i64: 8, 128>}]} {
    %c0 = arith.constant 0 : index
    %c0_0 = arith.constant 0 : index
    %0 = vector.load %arg1[%c0, %c0_0] : memref<8x128xbf16, #tpu.memory_space<vmem>>, vector<8x128xbf16>
    %c0_1 = arith.constant 0 : index
    %c0_2 = arith.constant 0 : index
    %1 = vector.load %arg2[%c0_1, %c0_2] : memref<128x128xbf16, #tpu.memory_space<vmem>>, vector<128x128xbf16>
    %cst = arith.constant dense<0.000000e+00> : vector<8x128xf32>
    %2 = tpu.matmul %0, %1, %cst {dimension_numbers = #tpu.dot_dimension_numbers<[1], [0], [0], [1], [0, 0, 1, 1], [], []>} : vector<8x128xbf16>, vector<128x128xbf16>, vector<8x128xf32> -> vector<8x128xf32>
    %c0_3 = arith.constant 0 : index
    %c0_4 = arith.constant 0 : index
    %3 = vector.load %arg3[%c0_3, %c0_4] : memref<1x128xf32, #tpu.memory_space<vmem>>, vector<1x128xf32>
    %4 = vector.broadcast %3 : vector<1x128xf32> to vector<8x128xf32>
    %5 = arith.addf %2, %4 : vector<8x128xf32>
    %6 = arith.truncf %5 : vector<8x128xf32> to vector<8x128xbf16>
    %c0_5 = arith.constant 0 : index
    %c0_6 = arith.constant 0 : index
    %7 = vector.load %arg4[%c0_5, %c0_6] : memref<128x128xbf16, #tpu.memory_space<vmem>>, vector<128x128xbf16>
    %cst_7 = arith.constant dense<0.000000e+00> : vector<8x128xf32>
    %8 = tpu.matmul %6, %7, %cst_7 {dimension_numbers = #tpu.dot_dimension_numbers<[1], [0], [0], [1], [0, 0, 1, 1], [], []>} : vector<8x128xbf16>, vector<128x128xbf16>, vector<8x128xf32> -> vector<8x128xf32>
    %c0_8 = arith.constant 0 : index
    %c0_9 = arith.constant 0 : index
    %9 = vector.load %arg5[%c0_8, %c0_9] : memref<1x128xf32, #tpu.memory_space<vmem>>, vector<1x128xf32>
    %10 = vector.broadcast %9 : vector<1x128xf32> to vector<8x128xf32>
    %11 = arith.addf %8, %10 : vector<8x128xf32>
    %cst_10 = arith.constant 0.000000e+00 : f32
    %12 = vector.broadcast %cst_10 : f32 to vector<8x128xf32>
    %13 = arith.maximumf %11, %12 : vector<8x128xf32>
    %14 = arith.truncf %13 : vector<8x128xf32> to vector<8x128xbf16>
    %c0_11 = arith.constant 0 : index
    %c0_12 = arith.constant 0 : index
    %15 = vector.load %arg6[%c0_11, %c0_12] : memref<128x128xbf16, #tpu.memory_space<vmem>>, vector<128x128xbf16>
    %cst_13 = arith.constant dense<0.000000e+00> : vector<8x128xf32>
    %16 = tpu.matmul %14, %15, %cst_13 {dimension_numbers = #tpu.dot_dimension_numbers<[1], [0], [0], [1], [0, 0, 1, 1], [], []>} : vector<8x128xbf16>, vector<128x128xbf16>, vector<8x128xf32> -> vector<8x128xf32>
    %c0_14 = arith.constant 0 : index
    %c0_15 = arith.constant 0 : index
    %17 = vector.load %arg7[%c0_14, %c0_15] : memref<1x128xf32, #tpu.memory_space<vmem>>, vector<1x128xf32>
    %18 = vector.broadcast %17 : vector<1x128xf32> to vector<8x128xf32>
    %19 = arith.addf %16, %18 : vector<8x128xf32>
    %cst_16 = arith.constant 0.000000e+00 : f32
    %20 = vector.broadcast %cst_16 : f32 to vector<8x128xf32>
    %21 = arith.maximumf %19, %20 : vector<8x128xf32>
    %22 = arith.truncf %21 : vector<8x128xf32> to vector<8x128xbf16>
    %c0_17 = arith.constant 0 : index
    %c0_18 = arith.constant 0 : index
    %23 = vector.load %arg8[%c0_17, %c0_18] : memref<128x128xbf16, #tpu.memory_space<vmem>>, vector<128x128xbf16>
    %cst_19 = arith.constant dense<0.000000e+00> : vector<8x128xf32>
    %24 = tpu.matmul %22, %23, %cst_19 {dimension_numbers = #tpu.dot_dimension_numbers<[1], [0], [0], [1], [0, 0, 1, 1], [], []>} : vector<8x128xbf16>, vector<128x128xbf16>, vector<8x128xf32> -> vector<8x128xf32>
    %c0_20 = arith.constant 0 : index
    %c0_21 = arith.constant 0 : index
    %25 = vector.load %arg9[%c0_20, %c0_21] : memref<1x128xf32, #tpu.memory_space<vmem>>, vector<1x128xf32>
    %26 = vector.broadcast %25 : vector<1x128xf32> to vector<8x128xf32>
    %27 = arith.addf %24, %26 : vector<8x128xf32>
    %c0_22 = arith.constant 0 : index
    %c0_23 = arith.constant 0 : index
    %28 = vector.load %arg10[%c0_22, %c0_23] : memref<8x128xf32, #tpu.memory_space<vmem>>, vector<8x128xf32>
    tpu.vector_store %arg10[%c0_22, %c0_23], %27 {strides = array<i32>} : memref<8x128xf32, #tpu.memory_space<vmem>>, vector<8x128xf32>,
    return
  }
  func.func @transform_0(%arg0: i32) -> (i32, i32) {
    %c0_i32 = arith.constant 0 : i32
    %c0_i32_0 = arith.constant 0 : i32
    return %arg0, %c0_i32 : i32, i32
  }
  func.func @transform_1(%arg0: i32) -> (i32, i32) {
    %c0_i32 = arith.constant 0 : i32
    %c0_i32_0 = arith.constant 0 : i32
    %c0_i32_1 = arith.constant 0 : i32
    return %c0_i32, %c0_i32_0 : i32, i32
  }
  func.func @transform_2(%arg0: i32) -> (i32, i32) {
    %c0_i32 = arith.constant 0 : i32
    %c0_i32_0 = arith.constant 0 : i32
    %c0_i32_1 = arith.constant 0 : i32
    return %c0_i32, %c0_i32_0 : i32, i32
  }
  func.func @transform_3(%arg0: i32) -> (i32, i32) {
    %c0_i32 = arith.constant 0 : i32
    %c0_i32_0 = arith.constant 0 : i32
    %c0_i32_1 = arith.constant 0 : i32
    return %c0_i32, %c0_i32_0 : i32, i32
  }
  func.func @transform_4(%arg0: i32) -> (i32, i32) {
    %c0_i32 = arith.constant 0 : i32
    %c0_i32_0 = arith.constant 0 : i32
    %c0_i32_1 = arith.constant 0 : i32
    return %c0_i32, %c0_i32_0 : i32, i32
  }
  func.func @transform_5(%arg0: i32) -> (i32, i32) {
    %c0_i32 = arith.constant 0 : i32
    %c0_i32_0 = arith.constant 0 : i32
    %c0_i32_1 = arith.constant 0 : i32
    return %c0_i32, %c0_i32_0 : i32, i32
  }
  func.func @transform_6(%arg0: i32) -> (i32, i32) {
    %c0_i32 = arith.constant 0 : i32
    %c0_i32_0 = arith.constant 0 : i32
    %c0_i32_1 = arith.constant 0 : i32
    return %c0_i32, %c0_i32_0 : i32, i32
  }
  func.func @transform_7(%arg0: i32) -> (i32, i32) {
    %c0_i32 = arith.constant 0 : i32
    %c0_i32_0 = arith.constant 0 : i32
    %c0_i32_1 = arith.constant 0 : i32
    return %c0_i32, %c0_i32_0 : i32, i32
  }
  func.func @transform_8(%arg0: i32) -> (i32, i32) {
    %c0_i32 = arith.constant 0 : i32
    %c0_i32_0 = arith.constant 0 : i32
    %c0_i32_1 = arith.constant 0 : i32
    return %c0_i32, %c0_i32_0 : i32, i32
  }
  func.func @transform_9(%arg0: i32) -> (i32, i32) {
    %c0_i32 = arith.constant 0 : i32
    %c0_i32_0 = arith.constant 0 : i32
    return %arg0, %c0_i32 : i32, i32
  }
}

</mosaic_0001>

<bundles_post_ra>
// kernel: tpu_custom_call.1
= control target key start
LH: loop header
LB: loop body
LE: loop exit
PB: predicated region body
PF: predicated region fallthrough
CT: control target
= control target key end

     0   :  { %14 = vsyncpa [#allocation3], 0  ;;  %s1032_s0 = inlined_call_operand.hbm [shape: bf16[8,128], index: 0, kind: input, shape index: {}]   ;;  %s1033_s1 = inlined_call_operand.hbm [shape: bf16[128,128], index: 1, kind: input, shape index: {}]   ;;  %s1034_s2 = inlined_call_operand.vmem [shape: f32[1,128], index: 2, kind: input, shape index: {}]   ;;  %s1035_s3 = inlined_call_operand.hbm [shape: bf16[128,128], index: 3, kind: input, shape index: {}]   ;;  %s1036_s4 = inlined_call_operand.vmem [shape: f32[1,128], index: 4, kind: input, shape index: {}]   ;;  %s1037_s5 = inlined_call_operand.hbm [shape: bf16[128,128], index: 5, kind: input, shape index: {}]   ;;  %s1038_s6 = inlined_call_operand.vmem [shape: f32[1,128], index: 6, kind: input, shape index: {}]   ;;  %s1039_s7 = inlined_call_operand.hbm [shape: bf16[128,128], index: 7, kind: input, shape index: {}]   ;;  %s1040_s8 = inlined_call_operand.vmem [shape: f32[1,128], index: 8, kind: input, shape index: {}]   ;;  %s1041_s9 = inlined_call_operand.hbm [shape: f32[8,128], index: 9, kind: output, shape index: {}]  }
   0x1   :  { %15 = vsyncpa [#allocation6], 0 }
   0x2   :  { %16 = vsyncpa [#allocation9], 0 }
   0x3   :  { %17 = vsyncpa [#allocation4], 0  ;;  %s890_s30 = smov [#allocation5]  }
   0x4   :  { %s33_s10 = sshll.u32 %s890_s30, 4  ;;  %s34_s10 = int_to_ptr.vmem [resolvable:$true] %s33_s10 }
   0x5   :  { %s770_s11 = scalar_lea.vmem %s34_s10, 1024  ;;  %p775_p1 = scmp.lt.s32.totalorder %s34_s10, %s34_s10 }
   0x6   :  { %p771_p0 = scmp.ne.s32.totalorder %s34_s10, %s770_s11  ;;  %p776_p2 = scmp.lt.s32.totalorder %s770_s11, %s770_s11 }
   0x8   :  { %p777_p3 = por %p776_p2, %p775_p1 }
   0xa   :  { %p778_p4 = pnand %p777_p3, %p771_p0 }
   0xc   :  { %781 = shalt.err (!%p778_p4)
}
   0xd   :  { %s891_s12 = smov 64   ;;  %s892_s13 = smov 4  }
   0xe   :  { %39 = dma.hbm_to_vmem [thread:$0]  %s1033_s1, 1024, %s34_s10, [#allocation6], %s891_s12, %s891_s12, %s892_s13  }
   0xf   :  { %s893_s16 = smov [#allocation8]   ;;  %s894_s18 = smov [#allocation2]  }
  0x10   :  { %s61_s17 = sshll.u32 %s893_s16, 4  ;;  %s24_s19 = sshll.u32 %s894_s18, 4  ;;  %s62_s17 = int_to_ptr.vmem [resolvable:$true] %s61_s17  ;;  %s25_s19 = int_to_ptr.vmem [resolvable:$true] %s24_s19 }
  0x11   :  { %s790_s20 = scalar_lea.vmem %s62_s17, 1024  ;;  %p795_p6 = scmp.lt.s32.totalorder %s62_s17, %s62_s17 }
  0x12   :  { %p791_p5 = scmp.ne.s32.totalorder %s62_s17, %s790_s20  ;;  %p796_p7 = scmp.lt.s32.totalorder %s790_s20, %s790_s20 }
  0x14   :  { %p797_p8 = por %p796_p7, %p795_p6 }
  0x16   :  { %p798_p9 = pnand %p797_p8, %p791_p5 }
  0x18   :  { %801 = shalt.err (!%p798_p9)
}
  0x19   :  { %67 = dma.hbm_to_vmem [thread:$0]  %s1037_s5, 1024, %s62_s17, [#allocation9], %s891_s12, %s891_s12, %s892_s13  }
  0x1a   :  { %s810_s1 = scalar_lea.vmem %s25_s19, 64  ;;  %p815_p11 = scmp.lt.s32.totalorder %s25_s19, %s25_s19 }
  0x1b   :  { %p811_p10 = scmp.ne.s32.totalorder %s25_s19, %s810_s1  ;;  %p816_p12 = scmp.lt.s32.totalorder %s810_s1, %s810_s1 }
  0x1d   :  { %p817_p13 = por %p816_p12, %p815_p11 }
  0x1f   :  { %p818_p0 = pnand %p817_p13, %p811_p10 }
  0x21   :  { %821 = shalt.err (!%p818_p0)
}
  0x22   :  { %27 = dma.hbm_to_vmem [thread:$0]  %s1032_s0, 64, %s25_s19, [#allocation3]  }
  0x23   :  { %s895_s25 = smov [#allocation7]   ;;  %s896_s27 = smov [#allocation10]  }
  0x24   :  { %s47_s26 = sshll.u32 %s895_s25, 4  ;;  %s75_s28 = sshll.u32 %s896_s27, 4  ;;  %s48_s26 = int_to_ptr.vmem [resolvable:$true] %s47_s26  ;;  %s76_s28 = int_to_ptr.vmem [resolvable:$true] %s75_s28 }
  0x25   :  { %s830_s29 = scalar_lea.vmem %s48_s26, 1024  ;;  %p835_p2 = scmp.lt.s32.totalorder %s48_s26, %s48_s26 }
  0x26   :  { %p831_p1 = scmp.ne.s32.totalorder %s48_s26, %s830_s29  ;;  %p836_p3 = scmp.lt.s32.totalorder %s830_s29, %s830_s29 }
  0x28   :  { %p837_p4 = por %p836_p3, %p835_p2 }
  0x2a   :  { %p838_p5 = pnand %p837_p4, %p831_p1 }
  0x2c   :  { %841 = shalt.err (!%p838_p5)
}
  0x2d   :  { %53 = dma.hbm_to_vmem [thread:$0]  %s1035_s3, 1024, %s48_s26, [#allocation6], %s891_s12, %s891_s12, %s892_s13  }
  0x2e   :  { %s850_s0 = scalar_lea.vmem %s76_s28, 1024  ;;  %p855_p7 = scmp.lt.s32.totalorder %s76_s28, %s76_s28 }
  0x2f   :  { %p851_p6 = scmp.ne.s32.totalorder %s76_s28, %s850_s0  ;;  %p856_p8 = scmp.lt.s32.totalorder %s850_s0, %s850_s0 }
  0x31   :  { %p857_p9 = por %p856_p8, %p855_p7 }
  0x33   :  { %p858_p10 = pnand %p857_p9, %p851_p6 }
  0x35   :  { %861 = shalt.err (!%p858_p10)
}
  0x36   :  { %81 = dma.hbm_to_vmem [thread:$0]  %s1039_s7, 1024, %s76_s28, [#allocation9], %s891_s12, %s891_s12, %s892_s13  }
  0x37   :  { %882 = dma.done.wait [#allocation3], 64  }
  0x38   :  { %883 = vsyncadd [#allocation3], 4294967232 }
  0x39   :  { %884 = dma.done.wait [#allocation6], 2048  }
  0x3a   :  { %885 = vsyncadd [#allocation6], 4294965248 }
  0x3b   :  { %886 = dma.done.wait [#allocation9], 2048  }
  0x3c   :  { %887 = vsyncadd [#allocation9], 4294965248  ;;  %v897_v0 = vmov 0.0   ;;  %vm898_vm0 = vmmov 0   ;;  %v730_v1 = vld [vmem:[#allocation5 + $0x38] sm:$0xff]   ;;  %v731_v2 = vld [vmem:[#allocation5 + $0x30] sm:$0xff]  }
  0x3d   :  { %640 = vmatprep.subr.bf16.mxu0 %v897_v0  ;;  %656 = vmatprep.mubr.msk.bf16.mxu0 %vm898_vm0, %v897_v0  ;;  %v732_v3 = vld [vmem:[#allocation5 + $0x28] sm:$0xff]   ;;  %v738_v4 = vld [vmem:[#allocation7 + $0x38] sm:$0xff]   ;;  %v733_v5 = vld [vmem:[#allocation5 + $0x20] sm:$0xff]   ;;  %s899_s16 = smov [#allocation11]  }
  0x3e   :  { %660 = vmatprep.subr.bf16.mxu1 %v897_v0  ;;  %676 = vmatprep.mubr.msk.bf16.mxu1 %vm898_vm0, %v897_v0  ;;  %v739_v6 = vld [vmem:[#allocation7 + $0x30] sm:$0xff]   ;;  %v734_v7 = vld [vmem:[#allocation5 + $0x18] sm:$0xff]   ;;  %v740_v8 = vld [vmem:[#allocation7 + $0x28] sm:$0xff]   ;;  %s557_s17 = sshll.u32 %s899_s16, 4  ;;  %s558_s17 = int_to_ptr.vmem [resolvable:$true] %s557_s17 }
  0x3f   :  { %641 = vmatpush3.bf16.msra.mxu0 %v730_v1  ;;  %661 = vmatpush3.bf16.msra.mxu1 %v738_v4  ;;  %v735_v9 = vld [vmem:[#allocation5 + $0x10] sm:$0xff]   ;;  %v741_v10 = vld [vmem:[#allocation7 + $0x20] sm:$0xff]   ;;  %v736_v11 = vld [vmem:[#allocation5 + $0x8] sm:$0xff]   ;;  %p867_p12 = scmp.lt.s32.totalorder %s558_s17, %s558_s17 }
  0x40   :  { %642 = vmatprep.subr.bf16.mxu0 %v897_v0  ;;  %662 = vmatprep.subr.bf16.mxu1 %v897_v0  ;;  %v742_v12 = vld [vmem:[#allocation7 + $0x18] sm:$0xff]   ;;  %v737_v13 = vld [vmem:[#allocation5] sm:$0xff]   ;;  %v743_v14 = vld [vmem:[#allocation7 + $0x10] sm:$0xff]  }
  0x41   :  { %v100_v15 = vld [vmem:[#allocation2] sm:$0xf]  ;;  %v744_v16 = vld [vmem:[#allocation7 + $0x8] sm:$0xff]   ;;  %v745_v17 = vld [vmem:[#allocation7] sm:$0xff]  }
  0x42   :  { %v746_v18 = vld [vmem:[#allocation8 + $0x38] sm:$0xff]   ;;  %v747_v19 = vld [vmem:[#allocation8 + $0x30] sm:$0xff]   ;;  %v748_v20 = vld [vmem:[#allocation8 + $0x28] sm:$0xff]  }
  0x43   :  { %643 = vmatpush3.bf16.msra.mxu0 %v731_v2  ;;  %663 = vmatpush3.bf16.msra.mxu1 %v739_v6  ;;  %v749_v21 = vld [vmem:[#allocation8 + $0x20] sm:$0xff]   ;;  %v750_v22 = vld [vmem:[#allocation8 + $0x18] sm:$0xff]   ;;  %v751_v23 = vld [vmem:[#allocation8 + $0x10] sm:$0xff]  }
  0x44   :  { %644 = vmatprep.subr.bf16.mxu0 %v897_v0  ;;  %664 = vmatprep.subr.bf16.mxu1 %v897_v0  ;;  %v568_v24 = vld [vmem:[%s1034_s2] ss:$0 sm:$0xff]  ;;  %v752_v31 = vld [vmem:[#allocation8 + $0x8] sm:$0xff]   ;;  %v753_v32 = vld [vmem:[#allocation8] sm:$0xff]  }
  0x45   :  { %v754_v33 = vld [vmem:[#allocation10 + $0x38] sm:$0xff]   ;;  %v755_v34 = vld [vmem:[#allocation10 + $0x30] sm:$0xff]   ;;  %v756_v35 = vld [vmem:[#allocation10 + $0x28] sm:$0xff]  }
  0x46   :  { %v757_v36 = vld [vmem:[#allocation10 + $0x20] sm:$0xff]   ;;  %v758_v37 = vld [vmem:[#allocation10 + $0x18] sm:$0xff]   ;;  %v759_v38 = vld [vmem:[#allocation10 + $0x10] sm:$0xff]  }
  0x47   :  { %645 = vmatpush3.bf16.msra.mxu0 %v732_v3  ;;  %665 = vmatpush3.bf16.msra.mxu1 %v740_v8  ;;  %v577_v39 = vld [vmem:[%s1036_s4] ss:$0 sm:$0xff]  ;;  %v760_v47 = vld [vmem:[#allocation10 + $0x8] sm:$0xff]   ;;  %v761_v48 = vld [vmem:[#allocation10] sm:$0xff]  }
  0x48   :  { %646 = vmatprep.subr.bf16.mxu0 %v897_v0  ;;  %666 = vmatprep.subr.bf16.mxu1 %v897_v0  ;;  %v586_v49 = vld [vmem:[%s1038_s6] ss:$0 sm:$0xff]  ;;  %s862_s6 = scalar_lea.vmem %s558_s17, 128 }
  0x49   :  { %v595_v57 = vld [vmem:[%s1040_s8] ss:$0 sm:$0xff]  ;;  %p863_p11 = scmp.ne.s32.totalorder %s558_s17, %s862_s6  ;;  %p868_p13 = scmp.lt.s32.totalorder %s862_s6, %s862_s6 }
  0x4b   :  { %647 = vmatpush3.bf16.msra.mxu0 %v733_v5  ;;  %667 = vmatpush3.bf16.msra.mxu1 %v741_v10  ;;  %p869_p0 = por %p868_p13, %p867_p12 }
  0x4c   :  { %648 = vmatprep.subr.bf16.mxu0 %v897_v0  ;;  %668 = vmatprep.subr.bf16.mxu1 %v897_v0 }
  0x4d   :  { %p870_p1 = pnand %p869_p0, %p863_p11 }
  0x4f   :  { %649 = vmatpush3.bf16.msra.mxu0 %v734_v7  ;;  %669 = vmatpush3.bf16.msra.mxu1 %v742_v12 }
  0x50   :  { %650 = vmatprep.subr.bf16.mxu0 %v897_v0  ;;  %670 = vmatprep.subr.bf16.mxu1 %v897_v0 }
  0x53   :  { %651 = vmatpush3.bf16.msra.mxu0 %v735_v9  ;;  %671 = vmatpush3.bf16.msra.mxu1 %v743_v14 }
  0x54   :  { %652 = vmatprep.subr.bf16.mxu0 %v897_v0  ;;  %672 = vmatprep.subr.bf16.mxu1 %v897_v0 }
  0x57   :  { %653 = vmatpush3.bf16.msra.mxu0 %v736_v11  ;;  %673 = vmatpush3.bf16.msra.mxu1 %v744_v16 }
  0x58   :  { %654 = vmatprep.subr.bf16.mxu0 %v897_v0  ;;  %674 = vmatprep.subr.bf16.mxu1 %v897_v0 }
  0x5b   :  { %655 = vmatpush3.bf16.msra.mxu0 %v737_v13  ;;  %675 = vmatpush3.bf16.msra.mxu1 %v745_v17 }
  0x5c   :  { %680 = vmatprep.subr.bf16.mxu0 %v897_v0  ;;  %700 = vmatprep.subr.bf16.mxu1 %v897_v0 }
  0x5e   :  { %657 = vmatmul.mubr.bf16.vlgmr.msra.gmra.mxu0 %v100_v15 }
  0x5f   :  { %696 = vmatprep.mubr.msk.bf16.mxu0 %vm898_vm0, %v897_v0  ;;  %681 = vmatpush3.bf16.msra.mxu0 %v746_v18 }
  0x60   :  { %682 = vmatprep.subr.bf16.mxu0 %v897_v0 }
  0x63   :  { %683 = vmatpush3.bf16.msra.mxu0 %v747_v19 }
  0x64   :  { %684 = vmatprep.subr.bf16.mxu0 %v897_v0 }
  0x67   :  { %685 = vmatpush3.bf16.msra.mxu0 %v748_v20 }
  0x68   :  { %686 = vmatprep.subr.bf16.mxu0 %v897_v0 }
  0x6b   :  { %687 = vmatpush3.bf16.msra.mxu0 %v749_v21 }
  0x6c   :  { %688 = vmatprep.subr.bf16.mxu0 %v897_v0 }
  0x6f   :  { %689 = vmatpush3.bf16.msra.mxu0 %v750_v22 }
  0x70   :  { %690 = vmatprep.subr.bf16.mxu0 %v897_v0 }
  0x73   :  { %691 = vmatpush3.bf16.msra.mxu0 %v751_v23 }
  0x74   :  { %692 = vmatprep.subr.bf16.mxu0 %v897_v0 }
  0x77   :  { %693 = vmatpush3.bf16.msra.mxu0 %v752_v31 }
  0x78   :  { %694 = vmatprep.subr.bf16.mxu0 %v897_v0 }
  0x7b   :  { %695 = vmatpush3.bf16.msra.mxu0 %v753_v32 }
 0x11e   :  { %v206_v25 = vpop.f32.mrf.mxu0 }
 0x11f   :  { %v207_v26 = vadd.f32 %v568_v24, %v206_v25 }
 0x120   :  { %v658_v27 = vpop.f32.mrf.mxu0 }
 0x121   :  { %v212_v28 = vpack.c.bf16 %v207_v26, %v207_v26 }
 0x122   :  { %v209_v29 = vpop.f32.mrf.mxu0 }
 0x123   :  { %677 = vmatmul.mubr.bf16.vlgmr.msra.gmra.mxu1 %v212_v28 }
 0x124   :  { %v659_v30 = vpop.f32.mrf.mxu0  ;;  %716 = vmatprep.mubr.msk.bf16.mxu1 %vm898_vm0, %v897_v0  ;;  %701 = vmatpush3.bf16.msra.mxu1 %v754_v33 }
 0x125   :  { %702 = vmatprep.subr.bf16.mxu1 %v897_v0 }
 0x128   :  { %703 = vmatpush3.bf16.msra.mxu1 %v755_v34 }
 0x129   :  { %704 = vmatprep.subr.bf16.mxu1 %v897_v0 }
 0x12c   :  { %705 = vmatpush3.bf16.msra.mxu1 %v756_v35 }
 0x12d   :  { %706 = vmatprep.subr.bf16.mxu1 %v897_v0 }
 0x130   :  { %707 = vmatpush3.bf16.msra.mxu1 %v757_v36 }
 0x131   :  { %708 = vmatprep.subr.bf16.mxu1 %v897_v0 }
 0x134   :  { %709 = vmatpush3.bf16.msra.mxu1 %v758_v37 }
 0x135   :  { %710 = vmatprep.subr.bf16.mxu1 %v897_v0 }
 0x138   :  { %711 = vmatpush3.bf16.msra.mxu1 %v759_v38 }
 0x139   :  { %712 = vmatprep.subr.bf16.mxu1 %v897_v0 }
 0x13c   :  { %713 = vmatpush3.bf16.msra.mxu1 %v760_v47 }
 0x13d   :  { %714 = vmatprep.subr.bf16.mxu1 %v897_v0 }
 0x140   :  { %715 = vmatpush3.bf16.msra.mxu1 %v761_v48 }
 0x1e3   :  { %v318_v40 = vpop.f32.mrf.mxu1 }
 0x1e4   :  { %v319_v41 = vadd.f32 %v577_v39, %v318_v40 }
 0x1e5   :  { %v678_v42 = vpop.f32.mrf.mxu1 }
 0x1e6   :  { %v324_v43 = vmax.f32 %v319_v41, 0.0 }
 0x1e7   :  { %v321_v44 = vpop.f32.mrf.mxu1 }
 0x1e8   :  { %v325_v45 = vpack.c.bf16 %v324_v43, %v324_v43 }
 0x1e9   :  { %v679_v46 = vpop.f32.mrf.mxu1 }
 0x1ea   :  { %697 = vmatmul.mubr.bf16.vlgmr.msra.gmra.mxu0 %v325_v45 }
 0x2aa   :  { %v431_v50 = vpop.f32.mrf.mxu0 }
 0x2ab   :  { %v432_v51 = vadd.f32 %v586_v49, %v431_v50 }
 0x2ac   :  { %v698_v52 = vpop.f32.mrf.mxu0 }
 0x2ad   :  { %v437_v53 = vmax.f32 %v432_v51, 0.0 }
 0x2ae   :  { %v434_v54 = vpop.f32.mrf.mxu0 }
 0x2af   :  { %v438_v55 = vpack.c.bf16 %v437_v53, %v437_v53 }
 0x2b0   :  { %v699_v56 = vpop.f32.mrf.mxu0 }
 0x2b1   :  { %717 = vmatmul.mubr.bf16.vlgmr.msra.gmra.mxu1 %v438_v55 }
 0x371   :  { %v544_v58 = vpop.f32.mrf.mxu1 }
 0x372   :  { %v545_v59 = vadd.f32 %v595_v57, %v544_v58 }
 0x373   :  { %v718_v60 = vpop.f32.mrf.mxu1 }
 0x374   :  { %550 = vst [vmem:[#allocation11] sm:$0xff] %v545_v59 }
 0x375   :  { %v547_v61 = vpop.f32.mrf.mxu1 }
 0x376   :  { %873 = shalt.err (!%p870_p1)
}
 0x377   :  { %560 = dma.vmem_to_hbm [thread:$0]  %s558_s17, 128, %s1041_s9, [#allocation4]   ;;  %v719_v62 = vpop.f32.mrf.mxu1 }
 0x378   :  { %888 = dma.done.wait [#allocation4], 128  }
 0x379   :  { %889 = vsyncadd [#allocation4], 4294967168 }
 0x37a   :  { %564 = vsyncpa [#allocation3], 1 }
 0x37b   :  { %565 = vsyncpa [#allocation6], 1 }
 0x37c   :  { %566 = vsyncpa [#allocation9], 1 }
 0x37d   :  { %567 = vsyncpa [#allocation4], 1 }

</bundles_post_ra>
